<compile_context>
chip_gen: v7x
topology: tpu7x:2x2x1
jax: 0.10.0
libtpu: 0.0.40
codegen_flags: <defaults>
</compile_context>

<pallas_src>
import functools

import jax
import jax.numpy as jnp
from jax.experimental import pallas as pl
from jax.experimental.pallas import tpu as pltpu


DIM = 32
LATENT_DIM = 8
IN_W = 1 + LATENT_DIM            # packed kernel input width:  [x | eps]
OUT_W = 1 + 2 * LATENT_DIM       # packed kernel output width: [recon | mu | log_var]

# Packed-parameter row layout (all sections start at multiples of 8 sublanes).
ROW_VECS = 0                     # rows 0..7  : the small (1, .) rows (see pack_params)
ROW_WE2 = 8                      # rows 8..39 : encoder Linear(dim, dim) weight
ROW_WHEAD = 40                   # rows 40..71: fused [fc_mu | fc_var] weight (padded)
ROW_WD1 = 72                     # rows 72..79: decoder Linear(latent, dim) weight
ROW_WD2 = 80                     # rows 80..111: decoder Linear(dim, dim) weight
P_ROWS = 112


def _silu(x):
    return x * jax.nn.sigmoid(x)


def vae_kernel(xe_ref, p_ref, out_ref):
    f32 = jnp.float32
    L = LATENT_DIM

    xe = xe_ref[...].astype(f32)
    x = xe[:, 0:1]                      # (TB, 1)
    eps = xe[:, 1:1 + L]                # (TB, L)

    # ---- unpack parameters with static slices of the single packed buffer ----
    vecs = p_ref[ROW_VECS:ROW_VECS + 8, :]      # (8, DIM) -- all the (1, .) rows
    w_e1 = vecs[0:1, :]                         # (1, DIM)  encoder[0] weight as a row
    b_e1 = vecs[1:2, :]                         # (1, DIM)
    b_e2 = vecs[2:3, :]                         # (1, DIM)
    b_head = vecs[3:4, 0:2 * L]                 # (1, 2L)   [b_mu | b_var]
    b_d1 = vecs[4:5, :]                         # (1, DIM)
    b_d2 = vecs[5:6, :]                         # (1, DIM)
    w_d3_row = vecs[6:7, :]                     # (1, DIM)  decoder[4] weight as a row
    b_d3 = vecs[7:8, 0:1]                       # (1, 1)

    w_e2 = p_ref[ROW_WE2:ROW_WE2 + DIM, :]              # (DIM, DIM)
    w_head = p_ref[ROW_WHEAD:ROW_WHEAD + DIM, 0:2 * L]  # (DIM, 2L)  [w_mu | w_var]
    w_d1 = p_ref[ROW_WD1:ROW_WD1 + L, :]                # (L, DIM)
    w_d2 = p_ref[ROW_WD2:ROW_WD2 + DIM, :]              # (DIM, DIM)

    # ---- encoder ----
    # Linear(1, dim): contraction length 1 -> plain VPU broadcast, skip the MXU.
    h = _silu(x * w_e1 + b_e1)
    # Linear(dim, dim) on the MXU.
    h = _silu(jnp.dot(h, w_e2, preferred_element_type=f32) + b_e2)

    # ---- fused mu / log_var heads: one MXU pass over [w_mu | w_var] ----
    hv = jnp.dot(h, w_head, preferred_element_type=f32) + b_head   # (TB, 2L)
    mu = hv[:, 0:L]
    log_var = hv[:, L:2 * L]

    # ---- reparameterize: z = mu + eps * exp(0.5 * log_var) ----
    z = mu + eps * jnp.exp(0.5 * log_var)

    # ---- decoder ----
    d = _silu(jnp.dot(z, w_d1, preferred_element_type=f32) + b_d1)
    d = _silu(jnp.dot(d, w_d2, preferred_element_type=f32) + b_d2)
    # Linear(dim, 1): N=1 output -> elementwise mul + lane reduction, skip the MXU.
    recon = jnp.sum(d * w_d3_row, axis=-1, keepdims=True) + b_d3    # (TB, 1)

    # Single packed output block: [recon | mu | log_var]  (one writeback DMA).
    out_ref[:, 0:1] = recon.astype(out_ref.dtype)
    out_ref[:, 1:1 + L] = mu.astype(out_ref.dtype)
    out_ref[:, 1 + L:1 + 2 * L] = log_var.astype(out_ref.dtype)


def init_params(key, dim=DIM, latent_dim=LATENT_DIM):
    """PyTorch-Linear-like init: U[-1/sqrt(fan_in), +1/sqrt(fan_in)].

    Weights stored as (in_features, out_features); biases as (1, out_features).
    """
    layer_dims = [
        (1, dim),            # encoder[0]
        (dim, dim),          # encoder[2]
        (dim, latent_dim),   # fc_mu
        (dim, latent_dim),   # fc_var
        (latent_dim, dim),   # decoder[0]
        (dim, dim),          # decoder[2]
        (dim, 1),            # decoder[4]
    ]
    params = []
    keys = jax.random.split(key, 2 * len(layer_dims))
    for i, (fan_in, fan_out) in enumerate(layer_dims):
        bound = 1.0 / jnp.sqrt(jnp.float32(fan_in))
        w = jax.random.uniform(keys[2 * i], (fan_in, fan_out),
                               minval=-bound, maxval=bound, dtype=jnp.float32)
        b = jax.random.uniform(keys[2 * i + 1], (1, fan_out),
                               minval=-bound, maxval=bound, dtype=jnp.float32)
        params.append((w, b))
    return params


def pack_params(params, dim=DIM, latent_dim=LATENT_DIM):
    """Pack all 14 tensors into one (112, dim) f32 buffer (8-row aligned sections)."""
    (w_e1, b_e1), (w_e2, b_e2), (w_mu, b_mu), (w_var, b_var), \
        (w_d1, b_d1), (w_d2, b_d2), (w_d3, b_d3) = params

    def pad_cols(a):
        return jnp.pad(a, ((0, 0), (0, dim - a.shape[1])))

    w_head = jnp.concatenate([w_mu, w_var], axis=1)    # (dim, 2*latent)
    b_head = jnp.concatenate([b_mu, b_var], axis=1)    # (1, 2*latent)

    vec_rows = jnp.concatenate([
        w_e1,                 # row 0: Linear(1, dim) weight as a row
        b_e1,                 # row 1
        b_e2,                 # row 2
        pad_cols(b_head),     # row 3
        b_d1,                 # row 4
        b_d2,                 # row 5
        w_d3.T,               # row 6: Linear(dim, 1) weight as a row
        pad_cols(b_d3),       # row 7
    ], axis=0)                # (8, dim)

    packed = jnp.concatenate([
        vec_rows,             # rows 0..7
        w_e2,                 # rows 8..39
        pad_cols(w_head),     # rows 40..71
        w_d1,                 # rows 72..79
        w_d2,                 # rows 80..111
    ], axis=0).astype(jnp.float32)
    assert packed.shape == (P_ROWS, dim)
    return packed


@jax.jit
def vae_forward(x, eps, packed_params):
    """Runs the fused VAE forward. Returns (recon, mu, log_var)."""
    b = x.shape[0]
    xe = jnp.concatenate([x.astype(jnp.float32),
                          eps.astype(jnp.float32)], axis=-1)   # (B, 1+latent)

    # Batch tiling: single block for small B, otherwise multiple-of-8 tiles that
    # shard across TensorCores (v7x) via the 'parallel' grid axis.
    tb = b
    for cand in (512, 256, 128, 64, 32, 16, 8):
        if b >= cand and b % cand == 0:
            tb = cand
            break
    grid = (b // tb,)

    cost = pl.CostEstimate(
        flops=2 * b * (DIM * DIM + DIM * 2 * LATENT_DIM + LATENT_DIM * DIM + DIM * DIM),
        transcendentals=b * (4 * DIM + LATENT_DIM),
        bytes_accessed=4 * (b * IN_W + P_ROWS * DIM + b * OUT_W),
    )

    out = pl.pallas_call(
        vae_kernel,
        out_shape=jax.ShapeDtypeStruct((b, OUT_W), jnp.float32),
        grid=grid,
        in_specs=[
            pl.BlockSpec((tb, IN_W), lambda i: (i, 0)),
            # Constant index map -> packed weights stay VMEM-resident across steps.
            pl.BlockSpec((P_ROWS, DIM), lambda i: (0, 0)),
        ],
        out_specs=pl.BlockSpec((tb, OUT_W), lambda i: (i, 0)),
        compiler_params=pltpu.CompilerParams(
            dimension_semantics=("parallel",)),
        cost_estimate=cost,
    )(xe, packed_params)

    recon = out[:, 0:1]
    mu = out[:, 1:1 + LATENT_DIM]
    log_var = out[:, 1 + LATENT_DIM:1 + 2 * LATENT_DIM]
    return recon, mu, log_var


def vae_forward_ref(x, eps, params):
    """Pure-JAX reference (same math) for a correctness check."""
    (w_e1, b_e1), (w_e2, b_e2), (w_mu, b_mu), (w_var, b_var), \
        (w_d1, b_d1), (w_d2, b_d2), (w_d3, b_d3) = params
    h = _silu(x @ w_e1 + b_e1)
    h = _silu(h @ w_e2 + b_e2)
    mu = h @ w_mu + b_mu
    log_var = h @ w_var + b_var
    z = mu + eps * jnp.exp(0.5 * log_var)
    d = _silu(z @ w_d1 + b_d1)
    d = _silu(d @ w_d2 + b_d2)
    recon = d @ w_d3 + b_d3
    return recon, mu, log_var


if __name__ == "__main__":
    key = jax.random.PRNGKey(0)
    k_param, k_x, k_eps = jax.random.split(key, 3)

    batch = 8
    params = init_params(k_param)
    packed = pack_params(params)

    x = jax.random.normal(k_x, (batch, 1), dtype=jnp.float32)
    # eps plays the role of torch.randn_like(std) in reparameterize.
    eps = jax.random.normal(k_eps, (batch, LATENT_DIM), dtype=jnp.float32)

    recon, mu, log_var = vae_forward(x, eps, packed)
    jax.block_until_ready((recon, mu, log_var))

    recon_r, mu_r, logvar_r = vae_forward_ref(x, eps, params)
    assert recon.shape == (batch, 1)
    assert mu.shape == (batch, LATENT_DIM)
    assert log_var.shape == (batch, LATENT_DIM)
    assert jnp.allclose(recon, recon_r, atol=1e-5, rtol=1e-5)
    assert jnp.allclose(mu, mu_r, atol=1e-5, rtol=1e-5)
    assert jnp.allclose(log_var, logvar_r, atol=1e-5, rtol=1e-5)

    print("KERNEL_OK")
</pallas_src>

<mosaic_0001>
module attributes {stable_mosaic.version = 11 : i64} {
  func.func @vae_kernel(%arg0: i32, %arg1: memref<8x9xf32, #tpu.memory_space<vmem>>, %arg2: memref<112x32xf32, #tpu.memory_space<vmem>>, %arg3: memref<8x17xf32, #tpu.memory_space<vmem>>) attributes {dimension_semantics = [#tpu.dimension_semantics<parallel>], iteration_bounds = array<i64: 1>, scalar_prefetch = 0 : i64, scratch_operands = 0 : i64, tpu.core_type = #tpu.core_type<tc>, window_params = [{transform_indices = @transform_0, window_bounds = array<i64: 8, 9>}, {pipeline_mode = #tpu.pipeline_mode<synchronous>, transform_indices = @transform_1, window_bounds = array<i64: 112, 32>}, {transform_indices = @transform_2, window_bounds = array<i64: 8, 17>}]} {
    %c0 = arith.constant 0 : index
    %c0_0 = arith.constant 0 : index
    %0 = vector.load %arg1[%c0, %c0_0] : memref<8x9xf32, #tpu.memory_space<vmem>>, vector<8x9xf32>
    %1 = vector.extract_strided_slice %0 {offsets = [0, 0], sizes = [8, 1], strides = [1, 1]} : vector<8x9xf32> to vector<8x1xf32>
    %2 = vector.extract_strided_slice %0 {offsets = [0, 1], sizes = [8, 8], strides = [1, 1]} : vector<8x9xf32> to vector<8x8xf32>
    %c0_1 = arith.constant 0 : index
    %c0_2 = arith.constant 0 : index
    %3 = vector.load %arg2[%c0_1, %c0_2] : memref<112x32xf32, #tpu.memory_space<vmem>>, vector<8x32xf32>
    %4 = vector.extract_strided_slice %3 {offsets = [0, 0], sizes = [1, 32], strides = [1, 1]} : vector<8x32xf32> to vector<1x32xf32>
    %5 = vector.extract_strided_slice %3 {offsets = [1, 0], sizes = [1, 32], strides = [1, 1]} : vector<8x32xf32> to vector<1x32xf32>
    %6 = vector.extract_strided_slice %3 {offsets = [2, 0], sizes = [1, 32], strides = [1, 1]} : vector<8x32xf32> to vector<1x32xf32>
    %7 = vector.extract_strided_slice %3 {offsets = [3, 0], sizes = [1, 16], strides = [1, 1]} : vector<8x32xf32> to vector<1x16xf32>
    %8 = vector.extract_strided_slice %3 {offsets = [4, 0], sizes = [1, 32], strides = [1, 1]} : vector<8x32xf32> to vector<1x32xf32>
    %9 = vector.extract_strided_slice %3 {offsets = [5, 0], sizes = [1, 32], strides = [1, 1]} : vector<8x32xf32> to vector<1x32xf32>
    %10 = vector.extract_strided_slice %3 {offsets = [6, 0], sizes = [1, 32], strides = [1, 1]} : vector<8x32xf32> to vector<1x32xf32>
    %11 = vector.extract_strided_slice %3 {offsets = [7, 0], sizes = [1, 1], strides = [1, 1]} : vector<8x32xf32> to vector<1x1xf32>
    %c8 = arith.constant 8 : index
    %c0_3 = arith.constant 0 : index
    %12 = vector.load %arg2[%c8, %c0_3] : memref<112x32xf32, #tpu.memory_space<vmem>>, vector<32x32xf32>
    %c40 = arith.constant 40 : index
    %c0_4 = arith.constant 0 : index
    %13 = vector.load %arg2[%c40, %c0_4] : memref<112x32xf32, #tpu.memory_space<vmem>>, vector<32x16xf32>
    %c72 = arith.constant 72 : index
    %c0_5 = arith.constant 0 : index
    %14 = vector.load %arg2[%c72, %c0_5] : memref<112x32xf32, #tpu.memory_space<vmem>>, vector<8x32xf32>
    %c80 = arith.constant 80 : index
    %c0_6 = arith.constant 0 : index
    %15 = vector.load %arg2[%c80, %c0_6] : memref<112x32xf32, #tpu.memory_space<vmem>>, vector<32x32xf32>
    %16 = vector.broadcast %1 : vector<8x1xf32> to vector<8x32xf32>
    %17 = vector.broadcast %4 : vector<1x32xf32> to vector<8x32xf32>
    %18 = arith.mulf %16, %17 : vector<8x32xf32>
    %19 = vector.broadcast %5 : vector<1x32xf32> to vector<8x32xf32>
    %20 = arith.addf %18, %19 : vector<8x32xf32>
    %21 = arith.negf %20 : vector<8x32xf32>
    %22 = math.exp %21 : vector<8x32xf32>
    %cst = arith.constant 1.000000e+00 : f32
    %23 = vector.broadcast %cst : f32 to vector<8x32xf32>
    %24 = arith.addf %23, %22 : vector<8x32xf32>
    %25 = arith.divf %23, %24 : vector<8x32xf32>
    %26 = arith.mulf %20, %25 : vector<8x32xf32>
    %cst_7 = arith.constant dense<0.000000e+00> : vector<8x32xf32>
    %27 = tpu.matmul %26, %12, %cst_7 {dimension_numbers = #tpu.dot_dimension_numbers<[1], [0], [0], [1], [0, 0, 1, 1], [], []>} : vector<8x32xf32>, vector<32x32xf32>, vector<8x32xf32> -> vector<8x32xf32>
    %28 = vector.broadcast %6 : vector<1x32xf32> to vector<8x32xf32>
    %29 = arith.addf %27, %28 : vector<8x32xf32>
    %30 = arith.negf %29 : vector<8x32xf32>
    %31 = math.exp %30 : vector<8x32xf32>
    %cst_8 = arith.constant 1.000000e+00 : f32
    %32 = vector.broadcast %cst_8 : f32 to vector<8x32xf32>
    %33 = arith.addf %32, %31 : vector<8x32xf32>
    %34 = arith.divf %32, %33 : vector<8x32xf32>
    %35 = arith.mulf %29, %34 : vector<8x32xf32>
    %cst_9 = arith.constant dense<0.000000e+00> : vector<8x16xf32>
    %36 = tpu.matmul %35, %13, %cst_9 {dimension_numbers = #tpu.dot_dimension_numbers<[1], [0], [0], [1], [0, 0, 1, 1], [], []>} : vector<8x32xf32>, vector<32x16xf32>, vector<8x16xf32> -> vector<8x16xf32>
    %37 = vector.broadcast %7 : vector<1x16xf32> to vector<8x16xf32>
    %38 = arith.addf %36, %37 : vector<8x16xf32>
    %39 = vector.extract_strided_slice %38 {offsets = [0, 0], sizes = [8, 8], strides = [1, 1]} : vector<8x16xf32> to vector<8x8xf32>
    %40 = vector.extract_strided_slice %38 {offsets = [0, 8], sizes = [8, 8], strides = [1, 1]} : vector<8x16xf32> to vector<8x8xf32>
    %cst_10 = arith.constant 5.000000e-01 : f32
    %41 = vector.broadcast %cst_10 : f32 to vector<8x8xf32>
    %42 = arith.mulf %41, %40 : vector<8x8xf32>
    %43 = math.exp %42 : vector<8x8xf32>
    %44 = arith.mulf %2, %43 : vector<8x8xf32>
    %45 = arith.addf %39, %44 : vector<8x8xf32>
    %cst_11 = arith.constant dense<0.000000e+00> : vector<8x32xf32>
    %46 = tpu.matmul %45, %14, %cst_11 {dimension_numbers = #tpu.dot_dimension_numbers<[1], [0], [0], [1], [0, 0, 1, 1], [], []>} : vector<8x8xf32>, vector<8x32xf32>, vector<8x32xf32> -> vector<8x32xf32>
    %47 = vector.broadcast %8 : vector<1x32xf32> to vector<8x32xf32>
    %48 = arith.addf %46, %47 : vector<8x32xf32>
    %49 = arith.negf %48 : vector<8x32xf32>
    %50 = math.exp %49 : vector<8x32xf32>
    %cst_12 = arith.constant 1.000000e+00 : f32
    %51 = vector.broadcast %cst_12 : f32 to vector<8x32xf32>
    %52 = arith.addf %51, %50 : vector<8x32xf32>
    %53 = arith.divf %51, %52 : vector<8x32xf32>
    %54 = arith.mulf %48, %53 : vector<8x32xf32>
    %cst_13 = arith.constant dense<0.000000e+00> : vector<8x32xf32>
    %55 = tpu.matmul %54, %15, %cst_13 {dimension_numbers = #tpu.dot_dimension_numbers<[1], [0], [0], [1], [0, 0, 1, 1], [], []>} : vector<8x32xf32>, vector<32x32xf32>, vector<8x32xf32> -> vector<8x32xf32>
    %56 = vector.broadcast %9 : vector<1x32xf32> to vector<8x32xf32>
    %57 = arith.addf %55, %56 : vector<8x32xf32>
    %58 = arith.negf %57 : vector<8x32xf32>
    %59 = math.exp %58 : vector<8x32xf32>
    %cst_14 = arith.constant 1.000000e+00 : f32
    %60 = vector.broadcast %cst_14 : f32 to vector<8x32xf32>
    %61 = arith.addf %60, %59 : vector<8x32xf32>
    %62 = arith.divf %60, %61 : vector<8x32xf32>
    %63 = arith.mulf %57, %62 : vector<8x32xf32>
    %64 = vector.broadcast %10 : vector<1x32xf32> to vector<8x32xf32>
    %65 = arith.mulf %63, %64 : vector<8x32xf32>
    %cst_15 = arith.constant dense<0.000000e+00> : vector<8xf32>
    %66 = vector.multi_reduction <add>, %65, %cst_15 [1] : vector<8x32xf32> to vector<8xf32>
    %67 = vector.shape_cast %66 : vector<8xf32> to vector<8x1xf32>
    %68 = vector.broadcast %11 : vector<1x1xf32> to vector<8x1xf32>
    %69 = arith.addf %67, %68 : vector<8x1xf32>
    %c0_16 = arith.constant 0 : index
    %c0_17 = arith.constant 0 : index
    %70 = vector.load %arg3[%c0_16, %c0_17] : memref<8x17xf32, #tpu.memory_space<vmem>>, vector<8x1xf32>
    tpu.vector_store %arg3[%c0_16, %c0_17], %69 {strides = array<i32>} : memref<8x17xf32, #tpu.memory_space<vmem>>, vector<8x1xf32>,
    %c0_18 = arith.constant 0 : index
    %c1 = arith.constant 1 : index
    %71 = vector.load %arg3[%c0_18, %c1] : memref<8x17xf32, #tpu.memory_space<vmem>>, vector<8x8xf32>
    tpu.vector_store %arg3[%c0_18, %c1], %39 {strides = array<i32>} : memref<8x17xf32, #tpu.memory_space<vmem>>, vector<8x8xf32>,
    %c0_19 = arith.constant 0 : index
    %c9 = arith.constant 9 : index
    %72 = vector.load %arg3[%c0_19, %c9] : memref<8x17xf32, #tpu.memory_space<vmem>>, vector<8x8xf32>
    tpu.vector_store %arg3[%c0_19, %c9], %40 {strides = array<i32>} : memref<8x17xf32, #tpu.memory_space<vmem>>, vector<8x8xf32>,
    return
  }
  func.func @transform_0(%arg0: i32) -> (i32, i32) {
    %c0_i32 = arith.constant 0 : i32
    %c0_i32_0 = arith.constant 0 : i32
    return %arg0, %c0_i32 : i32, i32
  }
  func.func @transform_1(%arg0: i32) -> (i32, i32) {
    %c0_i32 = arith.constant 0 : i32
    %c0_i32_0 = arith.constant 0 : i32
    %c0_i32_1 = arith.constant 0 : i32
    return %c0_i32, %c0_i32_0 : i32, i32
  }
  func.func @transform_2(%arg0: i32) -> (i32, i32) {
    %c0_i32 = arith.constant 0 : i32
    %c0_i32_0 = arith.constant 0 : i32
    return %arg0, %c0_i32 : i32, i32
  }
}

</mosaic_0001>

<bundles_post_ra>
// kernel: vae_forward.1
= control target key start
LH: loop header
LB: loop body
LE: loop exit
PB: predicated region body
PF: predicated region fallthrough
CT: control target
= control target key end

     0   :  { %v526_v0 = vmov 0   ;;  %v527_v5 = vmov 0.0|0.0   ;;  %vm528_vm0 = vmmov 0   ;;  %v529_v9 = vmov 0.0   ;;  %s530_s30 = smov 121   ;;  %s531_s3 = smov 1   ;;  %s640_s0 = inlined_call_operand.vmem [shape: f32[8,9], index: 0, kind: input, shape index: {}]   ;;  %s641_s1 = inlined_call_operand.vmem [shape: f32[112,32], index: 1, kind: input, shape index: {}]   ;;  %s642_s2 = inlined_call_operand.vmem [shape: f32[8,17], index: 2, kind: output, shape index: {}]  }
   0x1   :  { %507 = vset.pattern.permute.xlu0 %v526_v0  ;;  %v551_v1 = vld [vmem:[%s640_s0] sm:$0xff]  ;;  %v13_v2 = vld [vmem:[%s641_s1 + $0x8] sm:$0xff]  ;;  %v14_v3 = vld [vmem:[%s641_s1 + $0x10] sm:$0xff]  ;;  %482 = vmatprep.subr.bf16.mxu0 %v527_v5  ;;  %v31_v10 = vlaneseq  ;;  %vm52_vm1 = vcmask 261120   ;;  %s532_s4 = smov 127   ;;  %vm227_vm2 = vcmask 64512  }
   0x2   :  { %28 = vperm.xlu0 %507, %v551_v1   ;;  %v483_v4 = vpack.c.bf16 %v14_v3, %v13_v2  ;;  %488 = vmatprep.subr.bf16.mxu1 %v527_v5  ;;  %v15_v6 = vld [vmem:[%s641_s1 + $0x18] sm:$0xff]  ;;  %v16_v7 = vld [vmem:[%s641_s1 + $0x20] sm:$0xff]  ;;  %v17_v25 = vld [vmem:[%s641_s1 + $0x28] sm:$0xff]  ;;  %vm405_vm3 = vcmask 7168   ;;  %vm411_vm4 = vcmask 72712   ;;  %vm413_vm5 = vcmask 138312  }
   0x3   :  { %v486_v8 = vpack.c.bf16 %v16_v7, %v15_v6  ;;  %452 = vmatprep.mubr.msk.f32.mxu0 %vm528_vm0, %v529_v9  ;;  %463 = vmatprep.mubr.msk.f32.mxu1 %vm528_vm0, %v529_v9  ;;  %v571_v11 = vshrl.u32 %v31_v10, 7  ;;  %v577_v13 = vld [vmem:[%s641_s1] sm:$0xff]  ;;  %v18_v26 = vld [vmem:[%s641_s1 + $0x30] sm:$0xff]  ;;  %v19_v28 = vld [vmem:[%s641_s1 + $0x38] sm:$0xff] }
   0x4   :  { %484 = vmatpush3.bf16.msra.mxu0 %v483_v4  ;;  %v489_v27 = vpack.c.bf16 %v18_v26, %v17_v25  ;;  %v20_v29 = vld [vmem:[%s641_s1 + $0x40] sm:$0xff]  ;;  %v21_v48 = vld [vmem:[%s641_s1 + $0x48] sm:$0xff]  ;;  %v22_v54 = vld [vmem:[%s641_s1 + $0x50] sm:$0xff] }
   0x5   :  { %485 = vmatprep.subr.bf16.mxu0 %v527_v5  ;;  %v33_v12 = vsub.s32 0, %v571_v11  ;;  %v38_v14 = vsub.s32 1, %v571_v11  ;;  %v492_v30 = vpack.c.bf16 %v20_v29, %v19_v28  ;;  %v50_v31 = vsub.s32 2, %v571_v11  ;;  %v23_v55 = vld [vmem:[%s641_s1 + $0x58] sm:$0xff]  ;;  %v24_v57 = vld [vmem:[%s641_s1 + $0x60] sm:$0xff]  ;;  %v25_v58 = vld [vmem:[%s641_s1 + $0x68] sm:$0xff] }
   0x6   :  { %490 = vmatpush3.bf16.msra.mxu1 %v489_v27  ;;  %v135_v41 = vsub.s32 3, %v571_v11  ;;  %v495_v56 = vpack.c.bf16 %v23_v55, %v22_v54  ;;  %v498_v59 = vpack.c.bf16 %v25_v58, %v24_v57  ;;  %v225_v60 = vsub.s32 4, %v571_v11 }
   0x7   :  { %v34_v15 = vrot.slane %v577_v13, %v33_v12  ;;  %v39_v16 = vrot.slane %v577_v13, %v38_v14  ;;  %491 = vmatprep.subr.bf16.mxu1 %v527_v5  ;;  %v51_v32 = vrot.slane %v577_v13, %v50_v31  ;;  %v310_v6 = vsub.s32 5, %v571_v11 }
   0x8   :  { %487 = vmatpush3.bf16.msra.mxu0 %v486_v8  ;;  %v136_v42 = vrot.slane %v577_v13, %v135_v41  ;;  %v226_v61 = vrot.slane %v577_v13, %v225_v60 }
   0x9   :  { %466 = vmatprep.subr.mxu0 %v529_v9  ;;  %v311_v7 = vrot.slane %v577_v13, %v310_v6 }
   0xa   :  { %493 = vmatpush3.bf16.msra.mxu1 %v492_v30 }
   0xb   :  { %494 = vmatprep.subr.bf16.mxu1 %v527_v5 }
  0x81   :  { %v29_v17 = vpop.permute.xlu0 %28 }
  0x82   :  { %v35_v18 = vmul.f32 %v34_v15, %v29_v17 }
  0x84   :  { %v40_v19 = vadd.f32 %v39_v16, %v35_v18  ;;  %v394_v16 = vsub.s32 6, %v571_v11 }
  0x86   :  { %v419_v20 = vmul.f32 -1.442695, %v40_v19  ;;  %v395_v17 = vrot.slane %v577_v13, %v394_v16 }
  0x88   :  { %508 = vpow2.f32 %v419_v20 }
  0x92   :  { %v509_v21 = vpop.eup %508 }
  0x93   :  { %v44_v22 = vadd.f32 1.0, %v509_v21 }
  0x95   :  { %510 = vrcp.f32 %v44_v22  ;;  %v402_v22 = vsub.s32 7, %v571_v11 }
  0x9f   :  { %v511_v23 = vpop.eup %510 }
  0xa0   :  { %v47_v24 = vmul.f32 %v511_v23, %v40_v19  ;;  %v403_v23 = vrot.slane %v577_v13, %v402_v22 }
  0xa2   :  { %453 = vmatmul.mubr.msk.f32.vlgmr.msra.gmra.mrb[0].mxu0 %vm52_vm1, %v47_v24 }
  0xa3   :  { %468 = vmatprep.mubr.msk.f32.mxu0 %vm528_vm0, %v529_v9  ;;  %467 = vmatpush3.msra.mxu0 %v21_v48 }
 0x175   :  { %v122_v33 = vpop.f32.mrb[0].mxu0 }
 0x176   :  { %v123_v34 = vadd.f32 %v122_v33, %v51_v32  ;;  %v454_v35 = vpop.f32.mrb[1].mxu0 }
 0x178   :  { %v421_v36 = vmul.f32 -1.442695, %v123_v34 }
 0x17a   :  { %512 = vpow2.f32 %v421_v36 }
 0x184   :  { %v513_v37 = vpop.eup %512 }
 0x185   :  { %v129_v38 = vadd.f32 1.0, %v513_v37 }
 0x187   :  { %514 = vrcp.f32 %v129_v38 }
 0x191   :  { %v515_v39 = vpop.eup %514 }
 0x192   :  { %v132_v40 = vmul.f32 %v515_v39, %v123_v34 }
 0x194   :  { %464 = vmatmul.mubr.msk.f32.vlgmr.msra.gmra.mrb[0].mxu1 %vm52_vm1, %v132_v40 }
 0x195   :  { %479 = vmatprep.mubr.msk.f32.mxu1 %vm528_vm0, %v529_v9  ;;  %496 = vmatpush3.bf16.msra.mxu1 %v495_v56 }
 0x196   :  { %497 = vmatprep.subr.bf16.mxu1 %v527_v5 }
 0x199   :  { %499 = vmatpush3.bf16.msra.mxu1 %v498_v59 }
 0x267   :  { %v206_v43 = vpop.f32.mrb[0].mxu1 }
 0x268   :  { %v207_v44 = vadd.f32 %v206_v43, %v136_v42  ;;  %v465_v45 = vpop.f32.mrb[1].mxu1 }
 0x26a   :  { %v210_v46 = vmul.f32 0.5, %v207_v44 }
 0x26c   :  { %v211_v47 = vmul.f32 1.442695, %v210_v46 }
 0x26e   :  { %516 = vpow2.f32 %v211_v47 }
 0x278   :  { %v517_v49 = vpop.eup %516 }
 0x279   :  { %214 = vrot.lane.b32.xlu0 %v517_v49, %s530_s30 }
 0x27d   :  { %408 = vrot.lane.b32.xlu0 %v207_v44, %s531_s3 }
 0x2eb   :  { %v215_v50 = vpop.permute.xlu0 %214 }
 0x2ec   :  { %v217_v51 = vmul.f32 %v215_v50, %v551_v1 }
 0x2ee   :  { %219 = vrot.lane.b32.xlu1 %v217_v51, %s532_s4 }
 0x2ef   :  { %v409_v26 = vpop.permute.xlu0 %408 }
 0x360   :  { %v220_v52 = vpop.permute.xlu1 %219 }
 0x361   :  { %v222_v53 = vadd.f32 %v220_v52, %v207_v44 }
 0x363   :  { %469 = vmatmul.mubr.msk.f32.vlgmr.msra.gmra.mrb[2].mxu0 %vm227_vm2, %v222_v53 }
 0x436   :  { %v297_v62 = vpop.f32.mrb[2].mxu0 }
 0x437   :  { %v298_v63 = vadd.f32 %v297_v62, %v226_v61  ;;  %v470_v0 = vpop.f32.mrb[3].mxu0 }
 0x439   :  { %v424_v1 = vmul.f32 -1.442695, %v298_v63 }
 0x43b   :  { %518 = vpow2.f32 %v424_v1 }
 0x445   :  { %v519_v2 = vpop.eup %518 }
 0x446   :  { %v304_v3 = vadd.f32 1.0, %v519_v2 }
 0x448   :  { %520 = vrcp.f32 %v304_v3 }
 0x452   :  { %v521_v4 = vpop.eup %520 }
 0x453   :  { %v307_v5 = vmul.f32 %v521_v4, %v298_v63 }
 0x455   :  { %480 = vmatmul.mubr.msk.f32.vlgmr.msra.gmra.mrb[2].mxu1 %vm52_vm1, %v307_v5 }
 0x528   :  { %v381_v8 = vpop.f32.mrb[2].mxu1 }
 0x529   :  { %v382_v9 = vadd.f32 %v381_v8, %v311_v7  ;;  %v481_v10 = vpop.f32.mrb[3].mxu1 }
 0x52b   :  { %v426_v12 = vmul.f32 -1.442695, %v382_v9 }
 0x52d   :  { %522 = vpow2.f32 %v426_v12 }
 0x537   :  { %v523_v14 = vpop.eup %522 }
 0x538   :  { %v388_v15 = vadd.f32 1.0, %v523_v14 }
 0x53a   :  { %524 = vrcp.f32 %v388_v15 }
 0x544   :  { %v525_v18 = vpop.eup %524 }
 0x545   :  { %v391_v19 = vmul.f32 %v525_v18, %v382_v9 }
 0x547   :  { %v396_v20 = vmul.f32 %v395_v17, %v391_v19 }
 0x549   :  { %v397_v21 = vsel %vm52_vm1, %v396_v20, 0.0 }
 0x54a   :  { %398 = vadd.xlane.f32.xlu1 %v397_v21 }
 0x5d7   :  { %v399_v24 = vpop.xlane.xlu1 %398 }
 0x5d8   :  { %v404_v25 = vadd.f32 %v403_v23, %v399_v24 }
 0x5da   :  { %406 = vst.msk [vmem:[%s642_s2] sm:$0xff] %vm405_vm3, %v404_v25 }
 0x5db   :  { %412 = vst.msk [vmem:[%s642_s2] sm:$0xff] %vm411_vm4, %v409_v26 }
 0x5dc   :  { %414 = vst.msk [vmem:[%s642_s2] sm:$0xff] %vm413_vm5, %v409_v26 }

</bundles_post_ra>
